<compile_context>
chip_gen: v7x
topology: tpu7x:2x2x1
jax: 0.10.0
libtpu: 0.0.40
codegen_flags: <defaults>
</compile_context>

<pallas_src>
import functools

import jax
import jax.numpy as jnp
from jax import lax
from jax.experimental import pallas as pl
from jax.experimental.pallas import tpu as pltpu

_LANES = 128


@functools.lru_cache(maxsize=None)
def _lane_shift_constants():
    """Shift constants s.t. pltpu.roll(x, s_k, axis=1)[..., i] == x[..., i + k].

    pltpu.roll is a lane rotation; probe its direction once on-device so the
    kernel's "value k lanes to the right" formulation is convention-proof.
    """
    def probe(x_ref, o_ref):
        o_ref[...] = pltpu.roll(x_ref[...], _LANES - 1, axis=1)

    x = jnp.broadcast_to(jnp.arange(_LANES, dtype=jnp.float32), (8, _LANES))
    out = pl.pallas_call(
        probe, out_shape=jax.ShapeDtypeStruct((8, _LANES), jnp.float32))(x)
    if int(out[0, 0]) == 1:           # jnp.roll convention: out[i] = x[i - s]
        return _LANES - 1, _LANES - 2
    return 1, 2                        # opposite convention: out[i] = x[i + s]


def _iou_loss_tile_kernel(o_ref, t_ref, part_ref, *, n_elems, n_boxes,
                          s_p1, s_p2):
    """o_ref/t_ref: (tile_rows, 128) tiles of the flat interleaved stream
    (x1,y1,x2,y2,x1,...).  part_ref: (1, 128) per-tile partial sum."""
    pid = pl.program_id(0)
    tr, ln = o_ref.shape

    of = o_ref[...].astype(jnp.float32)
    tf = t_ref[...].astype(jnp.float32)

    # roll_k(x)[r, i] == x[r, (i + k) % 128]: value k lanes to the right.
    roll1 = lambda x: pltpu.roll(x, s_p1, axis=1)
    roll2 = lambda x: pltpu.roll(x, s_p2, axis=1)

    # --- paired-box IoU (torchvision box_iou diagonal), lane-redundant -----
    # Results are only meaningful at lanes == 0 (mod 4); other lanes hold
    # garbage and are masked out of the sum below.
    mx = jnp.maximum(of, tf)                   # lanes 0/1 mod 4: max(x1), max(y1)
    mn = jnp.minimum(of, tf)                   # lanes 2/3 mod 4: min(x2), min(y2)
    wh = jnp.maximum(roll2(mn) - mx, 0.0)      # lane0: w, lane1: h
    inter = wh * roll1(wh)                     # lane0: w * h
    d_o = roll2(of) - of                       # lane0: x2o-x1o, lane1: y2o-y1o
    d_t = roll2(tf) - tf
    area_o = d_o * roll1(d_o)                  # lane0: output-box area
    area_t = d_t * roll1(d_t)                  # lane0: target-box area
    union = area_o + area_t - inter
    iou = inter / union  # exact divide (no eps): same semantics as torchvision

    # --- SmoothL1 (beta=1), purely elementwise on the interleaved data -----
    d = of - tf
    ad = jnp.abs(d)
    sl1 = jnp.where(ad < 1.0, 0.5 * d * d, ad - 0.5)

    # --- combine, folding in both means' scaling ----------------------------
    lane = lax.broadcasted_iota(jnp.int32, (tr, ln), 1)
    is_iou_lane = (lane & 3) == 0
    inv_nb = 1.0 / float(n_boxes)              # mean over B*C IoUs
    inv_ne = 1.0 / float(4 * n_boxes)          # mean over B*C*4 SmoothL1 terms
    combined = jnp.where(is_iou_lane, iou * inv_nb, 0.0) + sl1 * inv_ne

    last = pl.num_programs(0) - 1

    @pl.when(pid < last)
    def _():
        # Interior tiles are fully in-bounds: no masking work at all.
        part_ref[...] = jnp.sum(combined, axis=0, keepdims=True)

    @pl.when(pid == last)
    def _():
        # Only the last tile may contain the 128-alignment padding and/or
        # Pallas' own ragged-block padding: mask so 0/0 NaNs and garbage
        # never reach the sum.  (n_elems % 4 == 0, so element validity and
        # box validity coincide at lane granularity.)
        row = lax.broadcasted_iota(jnp.int32, (tr, ln), 0)
        gidx = (pid * tr + row) * ln + lane
        masked = jnp.where(gidx < n_elems, combined, 0.0)
        part_ref[...] = jnp.sum(masked, axis=0, keepdims=True)


def _iou_loss_dense(output, target):
    """Plain-XLA fallback for small inputs (identical math to the kernel)."""
    o = output.astype(jnp.float32)
    t = target.astype(jnp.float32)
    x1o, y1o, x2o, y2o = o[..., 0], o[..., 1], o[..., 2], o[..., 3]
    x1t, y1t, x2t, y2t = t[..., 0], t[..., 1], t[..., 2], t[..., 3]
    area_o = (x2o - x1o) * (y2o - y1o)
    area_t = (x2t - x1t) * (y2t - y1t)
    w = jnp.maximum(jnp.minimum(x2o, x2t) - jnp.maximum(x1o, x1t), 0.0)
    h = jnp.maximum(jnp.minimum(y2o, y2t) - jnp.maximum(y1o, y1t), 0.0)
    inter = w * h
    iou = inter / (area_o + area_t - inter)
    d = o - t
    ad = jnp.abs(d)
    sl1 = jnp.where(ad < 1.0, 0.5 * d * d, ad - 0.5)
    return jnp.mean(iou) + jnp.mean(sl1)


def iou_loss(output, target, *, tile_rows_max=2048,
             min_elems_for_kernel=1 << 17, core_parallel=False):
    """IoULoss forward: mean paired-box IoU + SmoothL1(beta=1, mean).

    output, target: (B, C, 4) boxes in (x1, y1, x2, y2) order, any float
    dtype (bf16 keeps its narrow HBM footprint).  Returns a f32 scalar.
    """
    assert output.shape == target.shape and output.shape[-1] == 4
    assert output.dtype == target.dtype

    n_boxes = 1
    for s in output.shape[:-1]:
        n_boxes *= s
    n_elems = 4 * n_boxes

    # Small-N fast path: a pallas launch costs more than letting XLA do it.
    if n_elems < max(min_elems_for_kernel, 1):
        return _iou_loss_dense(output, target)

    itemsize = jnp.dtype(output.dtype).itemsize
    min_rows = {4: 8, 2: 16, 1: 32}.get(itemsize, 8)  # sublane tile per dtype

    # Free row-major flatten: the natural interleaved (..., 4) layout goes
    # straight into the HBM->VMEM DMA; no transpose pass over HBM.
    of = output.reshape(-1)
    tf = target.reshape(-1)

    rows = pl.cdiv(n_elems, _LANES)
    n_aligned = rows * _LANES
    if n_aligned != n_elems:
        # Only fires when B*C % 32 != 0 (one extra copy of <=127 elements'
        # worth of alignment); keep producers 32-box aligned to avoid it.
        of = jnp.pad(of, (0, n_aligned - n_elems))
        tf = jnp.pad(tf, (0, n_aligned - n_elems))
    of = of.reshape(rows, _LANES)
    tf = tf.reshape(rows, _LANES)

    if rows <= tile_rows_max:
        tile_rows = rows              # single block = full extent (always legal)
    else:
        tile_rows = max((tile_rows_max // min_rows) * min_rows, min_rows)
    num_tiles = pl.cdiv(rows, tile_rows)

    s_p1, s_p2 = _lane_shift_constants()
    kernel = functools.partial(
        _iou_loss_tile_kernel, n_elems=n_elems, n_boxes=n_boxes,
        s_p1=s_p1, s_p2=s_p2)

    cost = pl.CostEstimate(
        flops=30 * num_tiles * tile_rows * _LANES,
        transcendentals=0,
        bytes_accessed=2 * rows * _LANES * itemsize + num_tiles * _LANES * 4,
    )

    # Default "parallel" works on all generations; on v7x switch to
    # CORE_PARALLEL if a trace shows only one TensorCore active.
    dim_sem = (pltpu.CORE_PARALLEL,) if core_parallel else ("parallel",)

    partials = pl.pallas_call(
        kernel,
        out_shape=jax.ShapeDtypeStruct((num_tiles, _LANES), jnp.float32),
        grid=(num_tiles,),
        in_specs=[
            pl.BlockSpec((tile_rows, _LANES), lambda i: (i, 0)),
            pl.BlockSpec((tile_rows, _LANES), lambda i: (i, 0)),
        ],
        out_specs=pl.BlockSpec((1, _LANES), lambda i: (i, 0)),
        compiler_params=pltpu.CompilerParams(
            dimension_semantics=dim_sem,
            # 1 MiB input blocks double-buffered + in-kernel f32 temporaries
            # stay well inside this on every generation (v7x: 64 MiB/TC).
            vmem_limit_bytes=32 * 1024 * 1024,
        ),
        cost_estimate=cost,
    )(of, tf)

    return jnp.sum(partials)


def _make_boxes(key, B, C):
    """Deterministic valid boxes (x2 > x1, y2 > y1)."""
    k1, k2 = jax.random.split(key)
    xy = jax.random.uniform(k1, (B, C, 2), minval=0.0, maxval=10.0)
    wh = jax.random.uniform(k2, (B, C, 2), minval=1.0, maxval=5.0)
    return jnp.concatenate([xy, xy + wh], axis=-1)  # (B, C, 4)


def _ref(o, t):
    """Independent plain-JAX reference (same math as the PyTorch module)."""
    o = o.astype(jnp.float32)
    t = t.astype(jnp.float32)
    x1o, y1o, x2o, y2o = o[..., 0], o[..., 1], o[..., 2], o[..., 3]
    x1t, y1t, x2t, y2t = t[..., 0], t[..., 1], t[..., 2], t[..., 3]
    ao = (x2o - x1o) * (y2o - y1o)
    at = (x2t - x1t) * (y2t - y1t)
    w = jnp.maximum(jnp.minimum(x2o, x2t) - jnp.maximum(x1o, x1t), 0.0)
    h = jnp.maximum(jnp.minimum(y2o, y2t) - jnp.maximum(y1o, y1t), 0.0)
    inter = w * h
    iou = inter / (ao + at - inter)
    d = o - t
    ad = jnp.abs(d)
    sl1 = jnp.where(ad < 1.0, 0.5 * d * d, ad - 0.5)
    return jnp.mean(iou) + jnp.mean(sl1)


if __name__ == "__main__":
    key = jax.random.PRNGKey(0)
    keys = jax.random.split(key, 8)

    # 1) Spec-sized small input (B=2, C=4) -> fast path (no pallas launch).
    out1, tgt1 = _make_boxes(keys[0], 2, 4), _make_boxes(keys[1], 2, 4)
    loss1 = iou_loss(out1, tgt1)
    jax.block_until_ready(loss1)
    assert jnp.allclose(loss1, _ref(out1, tgt1), rtol=1e-5, atol=1e-5), (
        loss1, _ref(out1, tgt1))

    # 2) Pallas path: multi-tile grid + ragged last block (4N % 128 == 0).
    out2, tgt2 = _make_boxes(keys[2], 32, 40), _make_boxes(keys[3], 32, 40)
    loss2 = iou_loss(out2, tgt2, tile_rows_max=32, min_elems_for_kernel=0)
    jax.block_until_ready(loss2)
    assert jnp.allclose(loss2, _ref(out2, tgt2), rtol=1e-5, atol=1e-5), (
        loss2, _ref(out2, tgt2))

    # 3) Pallas path: 4N % 128 != 0 -> 128-pad + in-kernel mask, single tile.
    out3, tgt3 = _make_boxes(keys[4], 3, 37), _make_boxes(keys[5], 3, 37)
    loss3 = iou_loss(out3, tgt3, min_elems_for_kernel=0)
    jax.block_until_ready(loss3)
    assert jnp.allclose(loss3, _ref(out3, tgt3), rtol=1e-5, atol=1e-5), (
        loss3, _ref(out3, tgt3))

    # 4) Pallas path with bf16 inputs (16-row sublane tiles, ragged last block).
    out4 = _make_boxes(keys[6], 64, 64).astype(jnp.bfloat16)
    tgt4 = _make_boxes(keys[7], 64, 64).astype(jnp.bfloat16)
    loss4 = iou_loss(out4, tgt4, tile_rows_max=48, min_elems_for_kernel=0)
    jax.block_until_ready(loss4)
    assert jnp.allclose(loss4, _ref(out4, tgt4), rtol=1e-4, atol=1e-4), (
        loss4, _ref(out4, tgt4))

    print("KERNEL_OK")
</pallas_src>

<mosaic_0001>
module attributes {stable_mosaic.version = 11 : i64} {
  func.func @probe(%arg0: memref<8x128xf32, #tpu.memory_space<vmem>>, %arg1: memref<8x128xf32, #tpu.memory_space<vmem>>) attributes {dimension_semantics = [], scalar_prefetch = 0 : i64, scratch_operands = 0 : i64, tpu.core_type = #tpu.core_type<tc>} {
    %c0 = arith.constant 0 : index
    %c0_0 = arith.constant 0 : index
    %0 = vector.load %arg0[%c0, %c0_0] : memref<8x128xf32, #tpu.memory_space<vmem>>, vector<8x128xf32>
    %c127_i32 = arith.constant 127 : i32
    %1 = tpu.dynamic_rotate %0 by %c127_i32 dim 1 : vector<8x128xf32>, i32 -> vector<8x128xf32>
    %c0_1 = arith.constant 0 : index
    %c0_2 = arith.constant 0 : index
    %2 = vector.load %arg1[%c0_1, %c0_2] : memref<8x128xf32, #tpu.memory_space<vmem>>, vector<8x128xf32>
    tpu.vector_store %arg1[%c0_1, %c0_2], %1 {strides = array<i32>} : memref<8x128xf32, #tpu.memory_space<vmem>>, vector<8x128xf32>,
    return
  }
}

</mosaic_0001>

<bundles_post_ra>
// kernel: tpu_custom_call.1
= control target key start
LH: loop header
LB: loop body
LE: loop exit
PB: predicated region body
PF: predicated region fallthrough
CT: control target
= control target key end

     0   :  { %6 = vsyncpa [#allocation3], 0  ;;  %s128_s0 = inlined_call_operand.hbm [shape: f32[8,128], index: 0, kind: input, shape index: {}]   ;;  %s129_s1 = inlined_call_operand.hbm [shape: f32[8,128], index: 1, kind: output, shape index: {}]  }
   0x1   :  { %7 = vsyncpa [#allocation4], 0  ;;  %s91_s6 = smov [#allocation2]   ;;  %s43_s10 = scalar_lea.hbm %s128_s0, 128 }
   0x2   :  { %s14_s7 = sshll.u32 %s91_s6, 4  ;;  %p44_p0 = scmp.ne.s32.totalorder %s128_s0, %s43_s10  ;;  %s15_s7 = int_to_ptr.vmem [resolvable:$true] %s14_s7 }
   0x3   :  { %p47_p1 = scmp.lt.u32.totalorder %s43_s10, %s128_s0 }
   0x5   :  { %p49_p2 = pnand %p47_p1, %p44_p0 }
   0x7   :  { %52 = shalt.err (!%p49_p2)
}
   0x8   :  { %s53_s15 = scalar_lea.vmem %s15_s7, 128  ;;  %p58_p4 = scmp.lt.s32.totalorder %s15_s7, %s15_s7 }
   0x9   :  { %p54_p3 = scmp.ne.s32.totalorder %s15_s7, %s53_s15  ;;  %p59_p5 = scmp.lt.s32.totalorder %s53_s15, %s53_s15 }
   0xb   :  { %p60_p6 = por %p59_p5, %p58_p4 }
   0xd   :  { %p61_p7 = pnand %p60_p6, %p54_p3 }
   0xf   :  { %64 = shalt.err (!%p61_p7)
}
  0x10   :  { %17 = dma.hbm_to_vmem [thread:$0]  %s128_s0, 128, %s15_s7, [#allocation3]  }
  0x11   :  { %87 = dma.done.wait [#allocation3], 128  }
  0x12   :  { %88 = vsyncadd [#allocation3], 4294967168  ;;  %v21_v0 = vld [vmem:[#allocation2] sm:$0xff]  ;;  %s92_s18 = smov 127   ;;  %s93_s19 = smov [#allocation5]  }
  0x13   :  { %22 = vrot.lane.b32.xlu0 %v21_v0, %s92_s18  ;;  %s31_s20 = sshll.u32 %s93_s19, 4  ;;  %s32_s20 = int_to_ptr.vmem [resolvable:$true] %s31_s20 }
  0x14   :  { %s65_s21 = scalar_lea.vmem %s32_s20, 128  ;;  %p70_p9 = scmp.lt.s32.totalorder %s32_s20, %s32_s20 }
  0x15   :  { %p66_p8 = scmp.ne.s32.totalorder %s32_s20, %s65_s21  ;;  %p71_p10 = scmp.lt.s32.totalorder %s65_s21, %s65_s21 }
  0x17   :  { %p72_p11 = por %p71_p10, %p70_p9 }
  0x19   :  { %p73_p12 = pnand %p72_p11, %p66_p8 }
  0x85   :  { %v23_v1 = vpop.permute.xlu0 %22 }
  0x86   :  { %24 = vst [vmem:[#allocation5] sm:$0xff] %v23_v1 }
  0x87   :  { %76 = shalt.err (!%p73_p12)
}
  0x88   :  { %s77_s0 = scalar_lea.hbm %s129_s1, 128 }
  0x89   :  { %p78_p13 = scmp.ne.s32.totalorder %s129_s1, %s77_s0  ;;  %p81_p0 = scmp.lt.u32.totalorder %s77_s0, %s129_s1 }
  0x8b   :  { %p83_p1 = pnand %p81_p0, %p78_p13 }
  0x8d   :  { %86 = shalt.err (!%p83_p1)
}
  0x8e   :  { %34 = dma.vmem_to_hbm [thread:$0]  %s32_s20, 128, %s129_s1, [#allocation4]  }
  0x8f   :  { %89 = dma.done.wait [#allocation4], 128  }
  0x90   :  { %90 = vsyncadd [#allocation4], 4294967168 }
  0x91   :  { %38 = vsyncpa [#allocation3], 1 }
  0x92   :  { %39 = vsyncpa [#allocation4], 1 }

</bundles_post_ra>
